<compile_context>
chip_gen: v7x
topology: tpu7x:2x2x1
jax: 0.10.0
libtpu: 0.0.40
codegen_flags: <defaults>
</compile_context>

<pallas_src>
import jax
import jax.numpy as jnp
from jax import lax
from jax.experimental import pallas as pl
from jax.experimental.pallas import tpu as pltpu


_CHUNK_ROWS = 256        # rows per in-kernel compute chunk (128 KiB f32)
_MAX_BLOCK_ROWS = 4096   # rows per grid block (2 MiB f32 per buffer)


def _round_up(x, m):
    return ((x + m - 1) // m) * m


def _make_kernel(block_rows, chunk_rows):
    """Kernel over a (block_rows, 128) slab; 16 items per 128-lane row."""
    n_chunks = block_rows // chunk_rows

    def kernel(x_ref, o_ref):
        # Lane-position masks (constant across rows; hoisted out of the loop).
        lane = lax.broadcasted_iota(jnp.int32, (chunk_rows, 128), 1)
        mod8 = lane & 7
        bit0 = (mod8 & 1) != 0          # lanes k in {1,3,5,7}
        is_wh = (mod8 & 2) != 0          # lanes k in {2,3,6,7}  (w/h outputs)
        is_obj = (mod8 & 4) != 0         # lanes k in {4,5,6,7}  (object box)
        add_one = jnp.where(is_wh, jnp.float32(1.0), jnp.float32(0.0))

        def process(r0):
            x = x_ref[pl.ds(r0, chunk_rows), :].astype(jnp.float32)

            # Partner coordinate of the other box (j+4 for subject lanes,
            # j-4 for object lanes); min gives ux1/uy1 at lanes k in {0,1,4,5}.
            partner = jnp.where(is_obj,
                                pltpu.roll(x, 4, axis=1),      # x[j-4]
                                pltpu.roll(x, 124, axis=1))    # x[j+4]
            union_lo = jnp.minimum(x, partner)

            # Subtrahend per lane: ux1/uy1 for x/y lanes, own x1/y1 (lane j-2)
            # for the w/h lanes.  t = shifted coords / (w-1, h-1) + 1.
            subtrahend = jnp.where(is_wh, pltpu.roll(x, 2, axis=1), union_lo)
            t = x - subtrahend + add_one

            # Union x2/y2 at lanes k in {0,1}: max(x[j+2], x[j+6]).
            union_hi = jnp.maximum(pltpu.roll(x, 126, axis=1),
                                   pltpu.roll(x, 122, axis=1))
            wh = union_hi - union_lo + 1.0          # k=0: width, k=1: height
            area = wh * pltpu.roll(wh, 127, axis=1)  # valid at k=0: w*h
            inv = lax.rsqrt(area)                    # EUP slot

            # Log-broadcast inv from lane k=0 to all 8 lanes of each item.
            inv = jnp.where(bit0, pltpu.roll(inv, 1, axis=1), inv)
            inv = jnp.where(is_wh, pltpu.roll(inv, 2, axis=1), inv)
            inv = jnp.where(is_obj, pltpu.roll(inv, 4, axis=1), inv)

            o_ref[pl.ds(r0, chunk_rows), :] = (t * inv).astype(o_ref.dtype)

        if n_chunks == 1:
            process(0)
        else:
            def body(i, carry):
                process(pl.multiple_of(i * chunk_rows, chunk_rows))
                return carry
            lax.fori_loop(0, n_chunks, body, 0, unroll=False)

    return kernel


def cropped_box_coordinates(pair_objects):
    """pair_objects: (N, 2, D) with D >= 4, float.  Returns (N, 8)."""
    n = pair_objects.shape[0]
    d = pair_objects.shape[2]
    dtype = pair_objects.dtype

    if d == 4:
        boxes = pair_objects.reshape(n, 8)            # free reshape
    else:
        # TODO(synk): ask the producer for a packed (N, 8) slab to drop this
        # one extra HBM slice-copy pass.
        boxes = pair_objects[:, :, :4].reshape(n, 8)

    # Pad the batch only to the next multiple of 128 items (zero pad is
    # benign: union w = h = 1, finite outputs, discarded on the final slice).
    n_pad = _round_up(max(n, 1), 128)
    if n_pad != n:
        boxes = jnp.pad(boxes, ((0, n_pad - n), (0, 0)))

    rows = n_pad // 16                                # 16 items per lane row
    packed = boxes.reshape(rows, 128)                 # free, lane-dense

    if rows <= _CHUNK_ROWS:
        block_rows = rows
        chunk_rows = rows
    else:
        # Big blocks, but keep >= 2 grid steps so v7x can shard across its
        # 2 TensorCores; non-divisible last block is handled by Pallas
        # partial-block masking (no rounding up to a full tile multiple).
        block_rows = min(_MAX_BLOCK_ROWS,
                         _round_up(pl.cdiv(rows, 2), _CHUNK_ROWS))
        chunk_rows = _CHUNK_ROWS
    grid = (pl.cdiv(rows, block_rows),)

    out = pl.pallas_call(
        _make_kernel(block_rows, chunk_rows),
        out_shape=jax.ShapeDtypeStruct((rows, 128), dtype),
        grid=grid,
        in_specs=[pl.BlockSpec((block_rows, 128), lambda i: (i, 0))],
        out_specs=pl.BlockSpec((block_rows, 128), lambda i: (i, 0)),
        compiler_params=pltpu.CompilerParams(
            dimension_semantics=("parallel",),
            vmem_limit_bytes=32 * 1024 * 1024),
    )(packed)

    return out.reshape(n_pad, 8)[:n]                  # free reshape + slice


def _reference(pair_objects):
    """Pure-JAX reference mirroring the PyTorch forward."""
    sub = pair_objects[:, 0, :4]
    obj = pair_objects[:, 1, :4]
    union = jnp.concatenate(
        [jnp.minimum(sub[:, :2], obj[:, :2]),
         jnp.maximum(sub[:, 2:4], obj[:, 2:4])], axis=1)
    w = union[:, 2] - union[:, 0] + 1.0
    h = union[:, 3] - union[:, 1] + 1.0
    area = jnp.sqrt(w * h)[:, None]

    def trans(b):
        x1 = b[:, 0] - union[:, 0]
        y1 = b[:, 1] - union[:, 1]
        x2 = b[:, 2] - union[:, 0]
        y2 = b[:, 3] - union[:, 1]
        return jnp.stack([x1, y1, x2 - x1 + 1.0, y2 - y1 + 1.0], axis=1)

    sub_t = trans(sub) * (1.0 / area)
    obj_t = trans(obj) * (1.0 / area)
    return jnp.concatenate([sub_t, obj_t], axis=1)


def _make_inputs(key, n, d):
    k1, k2, k3 = jax.random.split(key, 3)
    xy1 = jax.random.uniform(k1, (n, 2, 2), jnp.float32, 0.0, 20.0)
    wh = jax.random.uniform(k2, (n, 2, 2), jnp.float32, 1.0, 30.0)
    xy2 = xy1 + wh
    parts = [xy1, xy2]
    if d > 4:
        parts.append(jax.random.uniform(k3, (n, 2, d - 4), jnp.float32))
    return jnp.concatenate(parts, axis=-1)            # (N, 2, D)


if __name__ == "__main__":
    key = jax.random.PRNGKey(0)
    k_a, k_b = jax.random.split(key)

    # Small case matching the module spec (D = 5: 4 box coords + 1 feature).
    pair_objects = _make_inputs(k_a, 8, 5)
    out = cropped_box_coordinates(pair_objects)
    jax.block_until_ready(out)
    ref = _reference(pair_objects)
    assert out.shape == (8, 8)
    assert jnp.allclose(out, ref, atol=1e-5, rtol=1e-5)

    # Medium case exercising batch padding, multi-step grid, partial blocks,
    # and the D == 4 free-reshape path.
    pair_objects2 = _make_inputs(k_b, 5000, 4)
    out2 = cropped_box_coordinates(pair_objects2)
    jax.block_until_ready(out2)
    ref2 = _reference(pair_objects2)
    assert out2.shape == (5000, 8)
    assert jnp.allclose(out2, ref2, atol=1e-5, rtol=1e-5)

    print("KERNEL_OK")
</pallas_src>

<mosaic_0001>
module attributes {stable_mosaic.version = 11 : i64} {
  func.func @kernel(%arg0: i32, %arg1: memref<8x128xf32, #tpu.memory_space<vmem>>, %arg2: memref<8x128xf32, #tpu.memory_space<vmem>>) attributes {dimension_semantics = [#tpu.dimension_semantics<parallel>], iteration_bounds = array<i64: 1>, scalar_prefetch = 0 : i64, scratch_operands = 0 : i64, tpu.core_type = #tpu.core_type<tc>, window_params = [{transform_indices = @transform_0, window_bounds = array<i64: 8, 128>}, {transform_indices = @transform_1, window_bounds = array<i64: 8, 128>}]} {
    %0 = tpu.iota {dimensions = array<i32: 1>} : vector<8x128xi32>
    %c7_i32 = arith.constant 7 : i32
    %1 = vector.broadcast %c7_i32 : i32 to vector<8x128xi32>
    %2 = arith.andi %0, %1 : vector<8x128xi32>
    %c1_i32 = arith.constant 1 : i32
    %3 = vector.broadcast %c1_i32 : i32 to vector<8x128xi32>
    %4 = arith.andi %2, %3 : vector<8x128xi32>
    %c0_i32 = arith.constant 0 : i32
    %5 = vector.broadcast %c0_i32 : i32 to vector<8x128xi32>
    %6 = arith.cmpi ne, %4, %5 : vector<8x128xi32>
    %c2_i32 = arith.constant 2 : i32
    %7 = vector.broadcast %c2_i32 : i32 to vector<8x128xi32>
    %8 = arith.andi %2, %7 : vector<8x128xi32>
    %c0_i32_0 = arith.constant 0 : i32
    %9 = vector.broadcast %c0_i32_0 : i32 to vector<8x128xi32>
    %10 = arith.cmpi ne, %8, %9 : vector<8x128xi32>
    %c4_i32 = arith.constant 4 : i32
    %11 = vector.broadcast %c4_i32 : i32 to vector<8x128xi32>
    %12 = arith.andi %2, %11 : vector<8x128xi32>
    %c0_i32_1 = arith.constant 0 : i32
    %13 = vector.broadcast %c0_i32_1 : i32 to vector<8x128xi32>
    %14 = arith.cmpi ne, %12, %13 : vector<8x128xi32>
    %cst = arith.constant 1.000000e+00 : f32
    %cst_2 = arith.constant 0.000000e+00 : f32
    %15 = vector.broadcast %cst : f32 to vector<8x128xf32>
    %16 = vector.broadcast %cst_2 : f32 to vector<8x128xf32>
    %17 = arith.select %10, %15, %16 : vector<8x128xi1>, vector<8x128xf32>
    %c0 = arith.constant 0 : index
    %c0_3 = arith.constant 0 : index
    %18 = vector.load %arg1[%c0, %c0_3] : memref<8x128xf32, #tpu.memory_space<vmem>>, vector<8x128xf32>
    %c4_i32_4 = arith.constant 4 : i32
    %19 = tpu.dynamic_rotate %18 by %c4_i32_4 dim 1 : vector<8x128xf32>, i32 -> vector<8x128xf32>
    %c124_i32 = arith.constant 124 : i32
    %20 = tpu.dynamic_rotate %18 by %c124_i32 dim 1 : vector<8x128xf32>, i32 -> vector<8x128xf32>
    %21 = arith.select %14, %19, %20 : vector<8x128xi1>, vector<8x128xf32>
    %22 = arith.minimumf %18, %21 : vector<8x128xf32>
    %c2_i32_5 = arith.constant 2 : i32
    %23 = tpu.dynamic_rotate %18 by %c2_i32_5 dim 1 : vector<8x128xf32>, i32 -> vector<8x128xf32>
    %24 = arith.select %10, %23, %22 : vector<8x128xi1>, vector<8x128xf32>
    %25 = arith.subf %18, %24 : vector<8x128xf32>
    %26 = arith.addf %25, %17 : vector<8x128xf32>
    %c126_i32 = arith.constant 126 : i32
    %27 = tpu.dynamic_rotate %18 by %c126_i32 dim 1 : vector<8x128xf32>, i32 -> vector<8x128xf32>
    %c122_i32 = arith.constant 122 : i32
    %28 = tpu.dynamic_rotate %18 by %c122_i32 dim 1 : vector<8x128xf32>, i32 -> vector<8x128xf32>
    %29 = arith.maximumf %27, %28 : vector<8x128xf32>
    %30 = arith.subf %29, %22 : vector<8x128xf32>
    %cst_6 = arith.constant 1.000000e+00 : f32
    %31 = vector.broadcast %cst_6 : f32 to vector<8x128xf32>
    %32 = arith.addf %30, %31 : vector<8x128xf32>
    %c127_i32 = arith.constant 127 : i32
    %33 = tpu.dynamic_rotate %32 by %c127_i32 dim 1 : vector<8x128xf32>, i32 -> vector<8x128xf32>
    %34 = arith.mulf %32, %33 : vector<8x128xf32>
    %35 = math.rsqrt %34 : vector<8x128xf32>
    %c1_i32_7 = arith.constant 1 : i32
    %36 = tpu.dynamic_rotate %35 by %c1_i32_7 dim 1 : vector<8x128xf32>, i32 -> vector<8x128xf32>
    %37 = arith.select %6, %36, %35 : vector<8x128xi1>, vector<8x128xf32>
    %c2_i32_8 = arith.constant 2 : i32
    %38 = tpu.dynamic_rotate %37 by %c2_i32_8 dim 1 : vector<8x128xf32>, i32 -> vector<8x128xf32>
    %39 = arith.select %10, %38, %37 : vector<8x128xi1>, vector<8x128xf32>
    %c4_i32_9 = arith.constant 4 : i32
    %40 = tpu.dynamic_rotate %39 by %c4_i32_9 dim 1 : vector<8x128xf32>, i32 -> vector<8x128xf32>
    %41 = arith.select %14, %40, %39 : vector<8x128xi1>, vector<8x128xf32>
    %42 = arith.mulf %26, %41 : vector<8x128xf32>
    %c0_10 = arith.constant 0 : index
    %c0_11 = arith.constant 0 : index
    %43 = vector.load %arg2[%c0_10, %c0_11] : memref<8x128xf32, #tpu.memory_space<vmem>>, vector<8x128xf32>
    tpu.vector_store %arg2[%c0_10, %c0_11], %42 {strides = array<i32>} : memref<8x128xf32, #tpu.memory_space<vmem>>, vector<8x128xf32>,
    return
  }
  func.func @transform_0(%arg0: i32) -> (i32, i32) {
    %c0_i32 = arith.constant 0 : i32
    %c0_i32_0 = arith.constant 0 : i32
    return %arg0, %c0_i32 : i32, i32
  }
  func.func @transform_1(%arg0: i32) -> (i32, i32) {
    %c0_i32 = arith.constant 0 : i32
    %c0_i32_0 = arith.constant 0 : i32
    return %arg0, %c0_i32 : i32, i32
  }
}

</mosaic_0001>

<bundles_post_ra>
// kernel: tpu_custom_call.1
= control target key start
LH: loop header
LB: loop body
LE: loop exit
PB: predicated region body
PF: predicated region fallthrough
CT: control target
= control target key end

     0   :  { %6 = vsyncpa [#allocation3], 0  ;;  %s194_s0 = inlined_call_operand.hbm [shape: f32[8,128], index: 0, kind: input, shape index: {}]   ;;  %s195_s1 = inlined_call_operand.hbm [shape: f32[8,128], index: 1, kind: output, shape index: {}]  }
   0x1   :  { %7 = vsyncpa [#allocation4], 0  ;;  %s140_s6 = smov [#allocation2]   ;;  %s92_s10 = scalar_lea.hbm %s194_s0, 128 }
   0x2   :  { %s14_s7 = sshll.u32 %s140_s6, 4  ;;  %p93_p0 = scmp.ne.s32.totalorder %s194_s0, %s92_s10  ;;  %s15_s7 = int_to_ptr.vmem [resolvable:$true] %s14_s7 }
   0x3   :  { %p96_p1 = scmp.lt.u32.totalorder %s92_s10, %s194_s0 }
   0x5   :  { %p98_p2 = pnand %p96_p1, %p93_p0 }
   0x7   :  { %101 = shalt.err (!%p98_p2)
}
   0x8   :  { %s102_s15 = scalar_lea.vmem %s15_s7, 128  ;;  %p107_p4 = scmp.lt.s32.totalorder %s15_s7, %s15_s7 }
   0x9   :  { %p103_p3 = scmp.ne.s32.totalorder %s15_s7, %s102_s15  ;;  %p108_p5 = scmp.lt.s32.totalorder %s102_s15, %s102_s15 }
   0xb   :  { %p109_p6 = por %p108_p5, %p107_p4 }
   0xd   :  { %p110_p7 = pnand %p109_p6, %p103_p3 }
   0xf   :  { %113 = shalt.err (!%p110_p7)
}
  0x10   :  { %17 = dma.hbm_to_vmem [thread:$0]  %s194_s0, 128, %s15_s7, [#allocation3]  }
  0x11   :  { %136 = dma.done.wait [#allocation3], 128  }
  0x12   :  { %137 = vsyncadd [#allocation3], 4294967168  ;;  %v31_v0 = vld [vmem:[#allocation2] sm:$0xff]  ;;  %s141_s18 = smov 126   ;;  %s142_s19 = smov 4   ;;  %v21_v1 = vlaneseq  ;;  %v148_v27 = vmov 0.0  }
  0x13   :  { %43 = vrot.lane.b32.xlu1 %v31_v0, %s141_s18  ;;  %32 = vrot.lane.b32.xlu0 %v31_v0, %s142_s19  ;;  %s143_s20 = smov 122   ;;  %s144_s21 = smov 124  }
  0x14   :  { %v22_v2 = vand.u32 127, %v21_v1  ;;  %s145_s0 = smov 127   ;;  %s146_s22 = smov 1  }
  0x15   :  { %s147_s23 = smov 2   ;;  %s149_s24 = smov [#allocation5]  }
  0x16   :  { %v23_v3 = vand.u32 7, %v22_v2  ;;  %s71_s25 = sshll.u32 %s149_s24, 4  ;;  %s72_s25 = int_to_ptr.vmem [resolvable:$true] %s71_s25 }
  0x17   :  { %45 = vrot.lane.b32.xlu1 %v31_v0, %s143_s20  ;;  %34 = vrot.lane.b32.xlu0 %v31_v0, %s144_s21  ;;  %s114_s26 = scalar_lea.vmem %s72_s25, 128  ;;  %p119_p9 = scmp.lt.s32.totalorder %s72_s25, %s72_s25 }
  0x18   :  { %v28_v4 = vand.u32 4, %v23_v3  ;;  %v24_v18 = vand.u32 1, %v23_v3  ;;  %v26_v21 = vand.u32 2, %v23_v3  ;;  %p115_p8 = scmp.ne.s32.totalorder %s72_s25, %s114_s26  ;;  %p120_p10 = scmp.lt.s32.totalorder %s114_s26, %s114_s26 }
  0x1a   :  { %vm173_vm0 = vcmp.ne.s32.totalorder %v28_v4, 0  ;;  %vm25_vm1 = vcmp.ne.s32.totalorder %v24_v18, 0  ;;  %vm27_vm2 = vcmp.ne.s32.totalorder %v26_v21, 0  ;;  %p121_p11 = por %p120_p10, %p119_p9 }
  0x1b   :  { %v30_v28 = vsel %vm27_vm2, 1.0, %v148_v27 }
  0x1c   :  { %p122_p12 = pnand %p121_p11, %p115_p8 }
  0x85   :  { %v44_v5 = vpop.permute.xlu1 %43  ;;  %v33_v6 = vpop.permute.xlu0 %32 }
  0x89   :  { %v46_v8 = vpop.permute.xlu1 %45  ;;  %v35_v9 = vpop.permute.xlu0 %34 }
  0x8a   :  { %v47_v10 = vmax.f32 %v44_v5, %v46_v8  ;;  %v36_v11 = vsel %vm173_vm0, %v33_v6, %v35_v9 }
  0x8b   :  { %v37_v12 = vmin.f32 %v31_v0, %v36_v11 }
  0x8d   :  { %v48_v13 = vsub.f32 %v47_v10, %v37_v12 }
  0x8f   :  { %v49_v14 = vadd.f32 1.0, %v48_v13 }
  0x91   :  { %50 = vrot.lane.b32.xlu0 %v49_v14, %s145_s0 }
 0x103   :  { %v51_v15 = vpop.permute.xlu0 %50 }
 0x104   :  { %v52_v16 = vmul.f32 %v51_v15, %v49_v14 }
 0x106   :  { %90 = vrsqrt.f32 %v52_v16 }
 0x110   :  { %v91_v17 = vpop.eup %90 }
 0x111   :  { %54 = vrot.lane.b32.xlu1 %v91_v17, %s146_s22 }
 0x115   :  { %38 = vrot.lane.b32.xlu1 %v31_v0, %s147_s23 }
 0x183   :  { %v55_v19 = vpop.permute.xlu1 %54 }
 0x184   :  { %v56_v20 = vsel %vm25_vm1, %v55_v19, %v91_v17 }
 0x185   :  { %57 = vrot.lane.b32.xlu0 %v56_v20, %s147_s23 }
 0x187   :  { %v39_v24 = vpop.permute.xlu1 %38 }
 0x188   :  { %v40_v25 = vsel %vm27_vm2, %v39_v24, %v37_v12 }
 0x189   :  { %v41_v26 = vsub.f32 %v31_v0, %v40_v25 }
 0x18b   :  { %v42_v30 = vadd.f32 %v41_v26, %v30_v28 }
 0x1f7   :  { %v58_v22 = vpop.permute.xlu0 %57 }
 0x1f8   :  { %v59_v23 = vsel %vm27_vm2, %v58_v22, %v56_v20 }
 0x1f9   :  { %60 = vrot.lane.b32.xlu0 %v59_v23, %s142_s19 }
 0x26b   :  { %v61_v29 = vpop.permute.xlu0 %60 }
 0x26c   :  { %v62_v31 = vsel %vm173_vm0, %v61_v29, %v59_v23 }
 0x26d   :  { %v63_v32 = vmul.f32 %v62_v31, %v42_v30 }
 0x26f   :  { %64 = vst [vmem:[#allocation5] sm:$0xff] %v63_v32 }
 0x270   :  { %125 = shalt.err (!%p122_p12)
}
 0x271   :  { %s126_s29 = scalar_lea.hbm %s195_s1, 128 }
 0x272   :  { %p127_p13 = scmp.ne.s32.totalorder %s195_s1, %s126_s29  ;;  %p130_p0 = scmp.lt.u32.totalorder %s126_s29, %s195_s1 }
 0x274   :  { %p132_p1 = pnand %p130_p0, %p127_p13 }
 0x276   :  { %135 = shalt.err (!%p132_p1)
}
 0x277   :  { %74 = dma.vmem_to_hbm [thread:$0]  %s72_s25, 128, %s195_s1, [#allocation4]  }
 0x278   :  { %138 = dma.done.wait [#allocation4], 128  }
 0x279   :  { %139 = vsyncadd [#allocation4], 4294967168 }
 0x27a   :  { %78 = vsyncpa [#allocation3], 1 }
 0x27b   :  { %79 = vsyncpa [#allocation4], 1 }

</bundles_post_ra>
